<compile_context>
chip_gen: v7x
topology: tpu7x:2x2x1
jax: 0.10.0
libtpu: 0.0.40
codegen_flags: <defaults>
</compile_context>

<pallas_src>
import functools

import jax
import jax.numpy as jnp
from jax.experimental import pallas as pl
from jax.experimental.pallas import tpu as pltpu


def _t2i_fused_kernel(p_ref, w_ref, b_ref, o_ref):
    # p_ref: (M, T)   all depths' prompts, flattened
    # w_ref: (T, V)   shared t2i weight (transposed vs PyTorch)
    # b_ref: (1, V)   bias
    # o_ref: (M, V)   output
    out = jnp.dot(p_ref[...], w_ref[...], preferred_element_type=jnp.float32)
    out = out + b_ref[...]
    o_ref[...] = out.astype(o_ref.dtype)


@functools.partial(jax.jit, static_argnames=("use_bf16",))
def maple_prompt_forward(textual_prompts, t2i_weight_t, t2i_bias, use_bf16=False):
    """textual_prompts: (depth, L, T) float32
       t2i_weight_t:    (T, V)        float32  (= PyTorch weight.T)
       t2i_bias:        (V,)          float32
       Returns (textual_prompts (depth,L,T), visual_prompts (depth,L,V)) stacked,
       matching the per-depth math of the PyTorch module (shared t2i)."""
    depth, L, T = textual_prompts.shape
    V = t2i_weight_t.shape[1]
    M = depth * L

    p2d = textual_prompts.reshape(M, T)       # free reshape (contiguous)
    w = t2i_weight_t
    b2d = t2i_bias.reshape(1, V).astype(jnp.float32)

    if use_bf16:
        # bf16 operands, f32 accumulation.  All of v5e/v6e/v7x have bf16-native
        # MXUs; this halves operand DMA bytes and (with bf16 output) halves the
        # writeback too, at ~1e-3 relative error.
        p2d = p2d.astype(jnp.bfloat16)
        w = w.astype(jnp.bfloat16)
        out_dtype = jnp.bfloat16
    else:
        out_dtype = jnp.float32

    in_itemsize = jnp.dtype(p2d.dtype).itemsize
    out_itemsize = jnp.dtype(out_dtype).itemsize
    cost = pl.CostEstimate(
        flops=2 * M * T * V,
        transcendentals=0,
        bytes_accessed=(p2d.size * in_itemsize
                        + w.size * in_itemsize
                        + b2d.size * 4
                        + M * V * out_itemsize),
    )

    # Single un-gridded invocation: whole arrays resident in VMEM, no pipeline,
    # no double-buffering.
    # TODO(synk): if depth*L grows into the hundreds with V >= 1024, tile M over
    # a 2-way "parallel" grid so both v7x TensorCores participate.
    vmem_spec = pl.BlockSpec(memory_space=pltpu.MemorySpace.VMEM)
    visual2d = pl.pallas_call(
        _t2i_fused_kernel,
        out_shape=jax.ShapeDtypeStruct((M, V), out_dtype),
        in_specs=[vmem_spec, vmem_spec, vmem_spec],
        out_specs=vmem_spec,
        cost_estimate=cost,
    )(p2d, w, b2d)

    visual = visual2d.reshape(depth, L, V)    # free reshape
    return textual_prompts, visual


def init_params(key, prompt_length, visual_dim, textual_dim, prompt_depth):
    """Deterministic parameter init mirroring the module's __init__ (shapes only)."""
    k_p, k_w, k_b = jax.random.split(key, 3)
    # VPT_Prompt: kaiming_normal_(fan_out) on (L, T) -> std = sqrt(2 / T)
    std_p = (2.0 / textual_dim) ** 0.5
    prompts = std_p * jax.random.normal(
        k_p, (prompt_depth, prompt_length, textual_dim), dtype=jnp.float32
    )
    # nn.Linear(textual_dim, visual_dim): weight (V, T), bias (V,), uniform(-1/sqrt(T), 1/sqrt(T))
    bound = 1.0 / (textual_dim ** 0.5)
    w = jax.random.uniform(
        k_w, (visual_dim, textual_dim), dtype=jnp.float32, minval=-bound, maxval=bound
    )
    b = jax.random.uniform(
        k_b, (visual_dim,), dtype=jnp.float32, minval=-bound, maxval=bound
    )
    return prompts, w.T, b  # weight pre-transposed (T, V) for the kernel


if __name__ == "__main__":
    # Small shapes consistent with the module's forward.
    prompt_length = 8
    textual_dim = 32
    visual_dim = 16
    prompt_depth = 2

    key = jax.random.PRNGKey(0)
    prompts, w_t, b = init_params(key, prompt_length, visual_dim, textual_dim, prompt_depth)

    # f32 path (default): bit-for-bit tolerance vs plain-JAX reference.
    textual, visual = maple_prompt_forward(prompts, w_t, b)
    jax.block_until_ready(visual)

    assert textual.shape == (prompt_depth, prompt_length, textual_dim)
    assert visual.shape == (prompt_depth, prompt_length, visual_dim)
    for i in range(prompt_depth):
        ref = prompts[i] @ w_t + b[None, :]
        assert jnp.allclose(visual[i], ref, atol=1e-5, rtol=1e-5)
        assert jnp.array_equal(textual[i], prompts[i])

    # Opt-in bf16 path (all TPU generations): halved operand/output bytes,
    # ~1e-3 relative error.
    _, visual_bf16 = maple_prompt_forward(prompts, w_t, b, use_bf16=True)
    jax.block_until_ready(visual_bf16)
    assert visual_bf16.shape == (prompt_depth, prompt_length, visual_dim)
    ref_all = jnp.einsum("dlt,tv->dlv", prompts, w_t) + b
    assert jnp.allclose(visual_bf16.astype(jnp.float32), ref_all, atol=5e-2, rtol=5e-2)

    print("KERNEL_OK")
</pallas_src>

<mosaic_0001>
module attributes {stable_mosaic.version = 11 : i64} {
  func.func @_t2i_fused_kernel(%arg0: memref<16x32xf32, #tpu.memory_space<vmem>>, %arg1: memref<32x16xf32, #tpu.memory_space<vmem>>, %arg2: memref<1x16xf32, #tpu.memory_space<vmem>>, %arg3: memref<16x16xf32, #tpu.memory_space<vmem>>) attributes {dimension_semantics = [], scalar_prefetch = 0 : i64, scratch_operands = 0 : i64, tpu.core_type = #tpu.core_type<tc>} {
    %c0 = arith.constant 0 : index
    %c0_0 = arith.constant 0 : index
    %0 = vector.load %arg0[%c0, %c0_0] : memref<16x32xf32, #tpu.memory_space<vmem>>, vector<16x32xf32>
    %c0_1 = arith.constant 0 : index
    %c0_2 = arith.constant 0 : index
    %1 = vector.load %arg1[%c0_1, %c0_2] : memref<32x16xf32, #tpu.memory_space<vmem>>, vector<32x16xf32>
    %cst = arith.constant dense<0.000000e+00> : vector<16x16xf32>
    %2 = tpu.matmul %0, %1, %cst {dimension_numbers = #tpu.dot_dimension_numbers<[1], [0], [0], [1], [0, 0, 1, 1], [], []>} : vector<16x32xf32>, vector<32x16xf32>, vector<16x16xf32> -> vector<16x16xf32>
    %c0_3 = arith.constant 0 : index
    %c0_4 = arith.constant 0 : index
    %3 = vector.load %arg2[%c0_3, %c0_4] : memref<1x16xf32, #tpu.memory_space<vmem>>, vector<1x16xf32>
    %4 = vector.broadcast %3 : vector<1x16xf32> to vector<16x16xf32>
    %5 = arith.addf %2, %4 : vector<16x16xf32>
    %c0_5 = arith.constant 0 : index
    %c0_6 = arith.constant 0 : index
    %6 = vector.load %arg3[%c0_5, %c0_6] : memref<16x16xf32, #tpu.memory_space<vmem>>, vector<16x16xf32>
    tpu.vector_store %arg3[%c0_5, %c0_6], %5 {strides = array<i32>} : memref<16x16xf32, #tpu.memory_space<vmem>>, vector<16x16xf32>,
    return
  }
}

</mosaic_0001>

<bundles_post_ra>
// kernel: maple_prompt_forward.1
= control target key start
LH: loop header
LB: loop body
LE: loop exit
PB: predicated region body
PF: predicated region fallthrough
CT: control target
= control target key end

     0   :  { %vm28_vm0 = vcmask 261120   ;;  %s240_s0 = inlined_call_operand.vmem [shape: f32[16,32], index: 0, kind: input, shape index: {}]   ;;  %s241_s1 = inlined_call_operand.vmem [shape: f32[32,16], index: 1, kind: input, shape index: {}]   ;;  %s242_s2 = inlined_call_operand.vmem [shape: f32[1,16], index: 2, kind: input, shape index: {}]   ;;  %s243_s3 = inlined_call_operand.hbm [shape: f32[16,16], index: 3, kind: output, shape index: {}]  }
   0x1   :  { %v17_v0 = vld [vmem:[%s241_s1] sm:$0xff]  ;;  %v18_v1 = vld [vmem:[%s241_s1 + $0x8] sm:$0xff]  ;;  %v19_v2 = vld [vmem:[%s241_s1 + $0x10] sm:$0xff] }
   0x2   :  { %v149_v3 = vpack.c.bf16 %v18_v1, %v17_v0  ;;  %v20_v4 = vld [vmem:[%s241_s1 + $0x18] sm:$0xff]  ;;  %v15_v5 = vld [vmem:[%s240_s0] sm:$0xff] }
   0x3   :  { %v153_v6 = vpack.c.bf16 %v20_v4, %v19_v2  ;;  %146 = vmatprep.mubr.msk.f32.mxu0 %vm28_vm0, %v15_v5 }
   0x4   :  { %8 = vsyncpa [#allocation3], 0  ;;  %150 = vmatprep.subr.bf16.mxu0 %v149_v3  ;;  %v16_v7 = vld [vmem:[%s240_s0 + $0x8] sm:$0xff]  ;;  %v129_v8 = vld [vmem:[%s242_s2] ss:$0 sm:$0xff]  ;;  %s184_s1 = smov [#allocation2]  }
   0x5   :  { %152 = vmatpush3.bf16.msra.mxu0 %v149_v3  ;;  %s118_s26 = sshll.u32 %s184_s1, 4  ;;  %vm110_vm1 = vcmask 130048   ;;  %s119_s26 = int_to_ptr.vmem [resolvable:$true] %s118_s26 }
   0x6   :  { %154 = vmatprep.subr.bf16.mxu0 %v153_v6  ;;  %s160_s27 = scalar_lea.vmem %s119_s26, 256  ;;  %p165_p1 = scmp.lt.s32.totalorder %s119_s26, %s119_s26 }
   0x7   :  { %p161_p0 = scmp.ne.s32.totalorder %s119_s26, %s160_s27  ;;  %p166_p2 = scmp.lt.s32.totalorder %s160_s27, %s160_s27 }
   0x9   :  { %156 = vmatpush3.bf16.msra.mxu0 %v153_v6  ;;  %p167_p3 = por %p166_p2, %p165_p1 }
   0xb   :  { %p168_p4 = pnand %p167_p3, %p161_p0 }
   0xc   :  { %147 = vmatmul.mubr.msk.f32.vlgmr.msra.gmra.mrb[0].mxu0 %vm28_vm0, %v16_v7 }
  0xdf   :  { %v148_v9 = vpop.f32.mrb[0].mxu0 }
  0xe0   :  { %v107_v10 = vadd.f32 %v148_v9, %v129_v8  ;;  %v101_v11 = vpop.f32.mrb[1].mxu0 }
  0xe1   :  { %v102_v12 = vadd.f32 %v129_v8, %v101_v11 }
  0xe2   :  { %112 = vst.msk [vmem:[#allocation2 + $0x8] sm:$0xff] %vm110_vm1, %v107_v10 }
  0xe3   :  { %111 = vst.msk [vmem:[#allocation2] sm:$0xff] %vm110_vm1, %v102_v12 }
  0xe4   :  { %171 = shalt.err (!%p168_p4)
}
  0xe5   :  { %s172_s2 = scalar_lea.hbm %s243_s3, 256 }
  0xe6   :  { %p173_p5 = scmp.ne.s32.totalorder %s243_s3, %s172_s2  ;;  %p176_p6 = scmp.lt.u32.totalorder %s172_s2, %s243_s3 }
  0xe8   :  { %p178_p7 = pnand %p176_p6, %p173_p5 }
  0xea   :  { %181 = shalt.err (!%p178_p7)
}
  0xeb   :  { %s185_s6 = smov 128   ;;  %s186_s7 = smov 8  }
  0xec   :  { %124 = dma.vmem_to_hbm [thread:$0]  %s119_s26, 256, %s243_s3, [#allocation3], %s185_s6, %s185_s6, %s186_s7  }
  0xed   :  { %182 = dma.done.wait [#allocation3], 256  }
  0xee   :  { %183 = vsyncadd [#allocation3], 4294967040 }
  0xef   :  { %128 = vsyncpa [#allocation3], 1 }

</bundles_post_ra>
